<compile_context>
chip_gen: v7x
topology: tpu7x:2x2x1
jax: 0.10.0
libtpu: 0.0.40
codegen_flags: <defaults>
</compile_context>

<pallas_src>
import functools

import jax
import jax.numpy as jnp
import numpy as np
from jax import lax
from jax.experimental import pallas as pl
from jax.experimental.pallas import tpu as pltpu

_LANE = 128
_SUBLANE = 8


def _round_up(a, b):
    return (a + b - 1) // b * b


def _separable_taps(normalize=True):
    """outer([1,3,3,1]) blur expressed as separable 1-D taps (exact in f32)."""
    k = np.array([1.0, 3.0, 3.0, 1.0], dtype=np.float64)
    if normalize:
        k = k / k.sum()  # (k/8) (x) (k/8) == outer(k,k)/64, exactly representable
    return tuple(float(v) for v in k)


def _vmem_capacity_bytes():
    try:
        info = pltpu.get_tpu_info()
        cap = getattr(info, "vmem_capacity_bytes", None)
        if cap:
            return int(cap)
    except Exception:
        pass
    return 64 * 2 ** 20  # conservative default (v7x per-core VMEM)


def _blur_kernel(x_hbm, o_hbm, in_buf, out_buf, row_ref, in_sem, out_sem, *,
                 taps, n_h, th, p_rows, wo_pad, stride):
    """One channel block (CB lanes) per grid step; inner loop over H tiles.

    x_hbm  : (n_c, Hp_pad, Wp_pad, CB)  zero-padded input, channels-last (HBM)
    o_hbm  : (n_c, Ho_pad, Wo_pad, CB)  output, channels-last (HBM)
    in_buf : (2, p_rows, Wp_pad, CB)    double-buffered input row windows (VMEM)
    out_buf: (2, th, Wo_pad, CB)        double-buffered output staging (VMEM)
    row_ref: (th, Wp_pad, CB) f32       H-pass intermediate (VMEM)
    """
    c = pl.program_id(0)

    def in_copy(h_idx, slot):
        return pltpu.make_async_copy(
            x_hbm.at[c, pl.ds(h_idx * (th * stride), p_rows), :, :],
            in_buf.at[slot],
            in_sem.at[slot])

    def out_copy(h_idx, slot):
        return pltpu.make_async_copy(
            out_buf.at[slot],
            o_hbm.at[c, pl.ds(h_idx * th, th), :, :],
            out_sem.at[slot])

    # Prime the pipeline: fetch H-tile 0.
    in_copy(0, 0).start()

    def h_tile(h, carry):
        slot = h % 2

        # Current input tile has landed.
        in_copy(0, slot).wait()

        # Prefetch the next H tile into the other buffer (overlaps compute).
        @pl.when(h + 1 < n_h)
        def _():
            in_copy(h + 1, 1 - slot).start()

        # The staging buffer for this slot was DMA'd out two tiles ago; make
        # sure that DMA finished before overwriting it.
        @pl.when(h >= 2)
        def _():
            out_copy(0, slot).wait()

        # --- separable 4-tap blur ------------------------------------------
        # H pass first: leading-axis windows are plain address offsets (no
        # sublane masking) and it shrinks the rows the W pass must touch
        # (p_rows -> th).
        def h_tap(a):
            if stride == 1:
                v = in_buf[slot, pl.ds(a, th), :, :]
            else:
                v = in_buf[slot, pl.ds(a, th, stride=stride), :, :]
            return v.astype(jnp.float32)

        row_ref[...] = (taps[0] * h_tap(0) + taps[1] * h_tap(1)
                        + taps[2] * h_tap(2) + taps[3] * h_tap(3))

        # W pass: 4 sublane-offset windows of the (smaller) row buffer; lanes
        # (channels) are untouched so stores stay lane-dense.
        # NOTE: offsets 1..3 are sublane-misaligned reads; if they ever show up
        # as the hot unit, move them to pltpu.roll (XLU slot) instead.
        def w_tap(b):
            if stride == 1:
                return row_ref[:, pl.ds(b, wo_pad), :]
            return row_ref[:, pl.ds(b, wo_pad, stride=stride), :]

        acc = (taps[0] * w_tap(0) + taps[1] * w_tap(1)
               + taps[2] * w_tap(2) + taps[3] * w_tap(3))
        out_buf[slot] = acc.astype(out_buf.dtype)

        # Send this tile's result back to HBM asynchronously.
        out_copy(h, slot).start()
        return carry

    lax.fori_loop(0, n_h, h_tile, 0)

    # Drain the (at most two) outstanding output DMAs before the next grid step
    # reuses the staging buffers.
    last_slot = (n_h - 1) % 2
    out_copy(0, last_slot).wait()
    if n_h >= 2:
        out_copy(0, 1 - last_slot).wait()


def _choose_tiling(nc, ho, wo, wp, stride, itemsize, block_rows, block_lanes):
    """Pick (channel-block lanes, output rows per H tile, scratch bytes)."""
    cap = _vmem_capacity_bytes()
    budget = min(int(cap * 0.4), 40 * 2 ** 20)

    lane_cap = _round_up(max(nc, 1), _LANE)
    if block_lanes is not None:
        cb0 = min(max(_LANE, _round_up(int(block_lanes), _LANE)), lane_cap)
    else:
        cb0 = min(2 * _LANE, lane_cap)  # default: 256-lane channel blocks

    wo_pad = _round_up(wo, _SUBLANE)
    wp_pad = _round_up(max(wp, (wo_pad - 1) * stride + 4), _SUBLANE)

    def need(t, cb):
        p_rows = stride * (t - 1) + 4
        scratch = (2 * p_rows * wp_pad * itemsize   # in_buf (double-buffered)
                   + 2 * t * wo_pad * itemsize      # out_buf (double-buffered)
                   + t * wp_pad * 4) * cb           # row_ref (f32)
        temps = 4 * t * wp_pad * 4 * cb             # elementwise temporaries
        return scratch + temps

    if block_rows is not None:
        t = max(1, min(int(block_rows), ho))
        return cb0, t, need(t, cb0)

    cand_cb = [cb0] if cb0 == _LANE else [cb0, _LANE]
    cand_th = [128, 96, 64, 48, 32, 24, 16, 12, 8, 6, 4, 2, 1]
    for cb in cand_cb:
        for t0 in cand_th:
            t = min(t0, ho)
            if need(t, cb) <= budget:
                return cb, t, need(t, cb)
    return _LANE, 1, need(1, _LANE)


def blur(x, pad, normalize=True, stride=1, *, block_rows=None, block_lanes=None):
    """Pallas equivalent of Blur(pad, normalize, stride).forward(x); x is NCHW."""
    n, c, h, w = x.shape
    left, right, top, bottom = pad
    hp, wp = h + top + bottom, w + left + right
    ho = (hp - 4) // stride + 1
    wo = (wp - 4) // stride + 1
    assert ho >= 1 and wo >= 1

    nc = n * c
    itemsize = np.dtype(x.dtype).itemsize
    cb, th, scratch_need = _choose_tiling(nc, ho, wo, wp, stride, itemsize,
                                          block_rows, block_lanes)

    n_c = -(-nc // cb)
    cp = n_c * cb                       # lane-padded channel*batch count
    n_h = -(-ho // th)
    ho_pad = n_h * th                   # output rows incl. last ragged tile
    p_rows = stride * (th - 1) + 4      # padded input rows needed per H tile
    wo_pad = _round_up(wo, _SUBLANE)
    wp_pad = _round_up(max(wp, (wo_pad - 1) * stride + 4), _SUBLANE)
    hp_pad = max(hp, (n_h * th - 1) * stride + 4)

    # Layout change NCHW -> (n_c, Hp_pad, Wp_pad, CB): channels on the lane axis
    # so every tap shift stays on sublane/leading axes and all stores are
    # lane-dense.  The spatial zero padding is folded into this (mandatory)
    # re-layout, so the kernel itself never zero-fills or copies misaligned
    # interiors.
    xr = x.reshape(nc, h, w)
    if cp != nc:
        # TODO(synk): for tiny NC (ToRGB skip, NC = 3*N) this wastes most lanes;
        # pack W sub-blocks into lanes or use the XLA depthwise conv there.
        xr = jnp.pad(xr, ((0, cp - nc), (0, 0), (0, 0)))
    xr = xr.reshape(n_c, cb, h, w)
    xt = jnp.transpose(xr, (0, 2, 3, 1))                     # (n_c, H, W, CB)
    xt = jnp.pad(xt, ((0, 0),
                      (top, hp_pad - top - h),
                      (left, wp_pad - left - w),
                      (0, 0)))

    taps = _separable_taps(normalize)
    kernel = functools.partial(_blur_kernel, taps=taps, n_h=n_h, th=th,
                               p_rows=p_rows, wo_pad=wo_pad, stride=stride)

    cap = _vmem_capacity_bytes()
    vmem_limit = int(max(16 * 2 ** 20, min(scratch_need + (2 << 20), cap)))

    out = pl.pallas_call(
        kernel,
        out_shape=jax.ShapeDtypeStruct((n_c, ho_pad, wo_pad, cb), x.dtype),
        grid=(n_c,),
        in_specs=[pl.BlockSpec(memory_space=pl.ANY)],
        out_specs=pl.BlockSpec(memory_space=pl.ANY),
        scratch_shapes=[
            pltpu.VMEM((2, p_rows, wp_pad, cb), x.dtype),    # in_buf
            pltpu.VMEM((2, th, wo_pad, cb), x.dtype),        # out_buf
            pltpu.VMEM((th, wp_pad, cb), jnp.float32),       # row_ref
            pltpu.SemaphoreType.DMA((2,)),                   # in_sem
            pltpu.SemaphoreType.DMA((2,)),                   # out_sem
        ],
        compiler_params=pltpu.CompilerParams(
            dimension_semantics=("parallel",),
            vmem_limit_bytes=vmem_limit,
        ),
    )(xt)

    out = jnp.transpose(out, (0, 3, 1, 2)).reshape(cp, ho_pad, wo_pad)
    out = out[:nc, :ho, :wo].reshape(n, c, ho, wo)
    return out


def _blur_reference(x, pad, normalize=True, stride=1):
    """Pure-JAX reference (depthwise conv) for the correctness check."""
    _, ch, _, _ = x.shape
    left, right, top, bottom = pad
    xp = jnp.pad(x, ((0, 0), (0, 0), (top, bottom), (left, right)))
    k = np.array([1.0, 3.0, 3.0, 1.0], dtype=np.float32)
    kern = k[:, None] * k[None, :]
    if normalize:
        kern = kern / kern.sum()
    wgt = jnp.broadcast_to(jnp.asarray(kern)[None, None], (ch, 1, 4, 4))
    return jax.lax.conv_general_dilated(
        xp, wgt,
        window_strides=(stride, stride),
        padding="VALID",
        dimension_numbers=("NCHW", "OIHW", "NCHW"),
        feature_group_count=ch,
    )


if __name__ == "__main__":
    key = jax.random.PRNGKey(0)

    configs = [
        # (N, C, H, W, pad, kwargs) -- configurations used inside GeneratorDecoder
        (2, 4, 16, 16, (1, 1, 1, 1), {}),   # GeneratorConv2d upsample blur
        (2, 4, 16, 16, (1, 2, 1, 2), {}),   # ToRGB skip blur
        (2, 4, 16, 16, (2, 2, 2, 2), {}),   # GeneratorConv2d downsample blur
        # multi-tile path: >128 channels + forced small H tiles exercises the
        # double-buffered DMA pipeline, ragged last H tile, and lane trimming
        (2, 80, 24, 24, (1, 1, 1, 1), dict(block_rows=8, block_lanes=128)),
    ]
    for i, (N, C, H, W, pad, kw) in enumerate(configs):
        key, sub = jax.random.split(key)
        x = jax.random.normal(sub, (N, C, H, W), dtype=jnp.float32)
        out = jax.block_until_ready(
            blur(x, pad=pad, normalize=True, stride=1, **kw))
        ref = _blur_reference(x, pad=pad, normalize=True, stride=1)
        assert out.shape == ref.shape, (i, out.shape, ref.shape)
        np.testing.assert_allclose(np.asarray(out), np.asarray(ref),
                                   rtol=1e-5, atol=1e-5)

    print("KERNEL_OK")
</pallas_src>

<mosaic_0001>
module attributes {stable_mosaic.version = 11 : i64} {
  func.func @_blur_kernel(%arg0: i32, %arg1: memref<1x18x24x128xf32, #tpu.memory_space<any>>, %arg2: memref<1x15x16x128xf32, #tpu.memory_space<any>>, %arg3: memref<2x18x24x128xf32, #tpu.memory_space<vmem>>, %arg4: memref<2x15x16x128xf32, #tpu.memory_space<vmem>>, %arg5: memref<15x24x128xf32, #tpu.memory_space<vmem>>, %arg6: memref<2x!tpu.dma_semaphore, #tpu.memory_space<semaphore_mem>>, %arg7: memref<2x!tpu.dma_semaphore, #tpu.memory_space<semaphore_mem>>) attributes {dimension_semantics = [#tpu.dimension_semantics<parallel>], iteration_bounds = array<i64: 1>, scalar_prefetch = 0 : i64, scratch_operands = 5 : i64, tpu.core_type = #tpu.core_type<tc>, window_params = [{}, {}]} {
    %c0_i32 = arith.constant 0 : i32
    %c0_i32_0 = arith.constant 0 : i32
    %c0_i32_1 = arith.constant 0 : i32
    %c0_i32_2 = arith.constant 0 : i32
    %c0_i32_3 = arith.constant 0 : i32
    %0 = tpu.memref_slice %arg1[%arg0, %c0_i32_1, %c0_i32_2, %c0_i32_3] : memref<1x18x24x128xf32, #tpu.memory_space<any>> -> memref<1x18x24x128xf32, #tpu.memory_space<any>>
    %1 = tpu.memref_squeeze %0 : memref<1x18x24x128xf32, #tpu.memory_space<any>> -> memref<18x24x128xf32, #tpu.memory_space<any>>
    %c0_i32_4 = arith.constant 0 : i32
    %c0_i32_5 = arith.constant 0 : i32
    %c0_i32_6 = arith.constant 0 : i32
    %2 = tpu.memref_slice %arg3[%c0_i32, %c0_i32_4, %c0_i32_5, %c0_i32_6] : memref<2x18x24x128xf32, #tpu.memory_space<vmem>> -> memref<1x18x24x128xf32, #tpu.memory_space<vmem>>
    %3 = tpu.memref_squeeze %2 : memref<1x18x24x128xf32, #tpu.memory_space<vmem>> -> memref<18x24x128xf32, #tpu.memory_space<vmem>>
    %4 = tpu.memref_slice %arg6[%c0_i32_0] : memref<2x!tpu.dma_semaphore, #tpu.memory_space<semaphore_mem>> -> memref<1x!tpu.dma_semaphore, #tpu.memory_space<semaphore_mem>>
    %5 = tpu.memref_squeeze %4 : memref<1x!tpu.dma_semaphore, #tpu.memory_space<semaphore_mem>> -> memref<!tpu.dma_semaphore, #tpu.memory_space<semaphore_mem>>
    tpu.enqueue_dma source(%1 : memref<18x24x128xf32, #tpu.memory_space<any>>) target(%3 : memref<18x24x128xf32, #tpu.memory_space<vmem>>) target_semaphore(%5 : memref<!tpu.dma_semaphore, #tpu.memory_space<semaphore_mem>>)
    %c0_i32_7 = arith.constant 0 : i32
    %c2_i32 = arith.constant 2 : i32
    %c0_i32_8 = arith.constant 0 : i32
    %6 = arith.cmpi eq, %c2_i32, %c0_i32_8 : i32
    %c1_i32 = arith.constant 1 : i32
    %7 = arith.select %6, %c1_i32, %c2_i32 : i32
    %8 = arith.remsi %c0_i32_7, %7 : i32
    %c0_i32_9 = arith.constant 0 : i32
    %9 = arith.cmpi ne, %8, %c0_i32_9 : i32
    %c0_i32_10 = arith.constant 0 : i32
    %10 = arith.cmpi slt, %8, %c0_i32_10 : i32
    %c0_i32_11 = arith.constant 0 : i32
    %11 = arith.cmpi slt, %7, %c0_i32_11 : i32
    %12 = arith.xori %10, %11 : i1
    %13 = arith.andi %12, %9 : i1
    %14 = arith.addi %8, %7 : i32
    %15 = arith.select %13, %14, %8 : i32
    %c0_i32_12 = arith.constant 0 : i32
    %c0_i32_13 = arith.constant 0 : i32
    %c0_i32_14 = arith.constant 0 : i32
    %16 = tpu.memref_slice %arg1[%arg0, %c0_i32_12, %c0_i32_13, %c0_i32_14] : memref<1x18x24x128xf32, #tpu.memory_space<any>> -> memref<1x18x24x128xf32, #tpu.memory_space<any>>
    %17 = tpu.memref_squeeze %16 : memref<1x18x24x128xf32, #tpu.memory_space<any>> -> memref<18x24x128xf32, #tpu.memory_space<any>>
    %c0_i32_15 = arith.constant 0 : i32
    %c0_i32_16 = arith.constant 0 : i32
    %c0_i32_17 = arith.constant 0 : i32
    %18 = tpu.memref_slice %arg3[%15, %c0_i32_15, %c0_i32_16, %c0_i32_17] : memref<2x18x24x128xf32, #tpu.memory_space<vmem>> -> memref<1x18x24x128xf32, #tpu.memory_space<vmem>>
    %19 = tpu.memref_squeeze %18 : memref<1x18x24x128xf32, #tpu.memory_space<vmem>> -> memref<18x24x128xf32, #tpu.memory_space<vmem>>
    %20 = tpu.memref_slice %arg6[%15] : memref<2x!tpu.dma_semaphore, #tpu.memory_space<semaphore_mem>> -> memref<1x!tpu.dma_semaphore, #tpu.memory_space<semaphore_mem>>
    %21 = tpu.memref_squeeze %20 : memref<1x!tpu.dma_semaphore, #tpu.memory_space<semaphore_mem>> -> memref<!tpu.dma_semaphore, #tpu.memory_space<semaphore_mem>>
    tpu.wait_dma2 semaphore(%21 : memref<!tpu.dma_semaphore, #tpu.memory_space<semaphore_mem>>) src(%17 : memref<18x24x128xf32, #tpu.memory_space<any>>) dst(%19 : memref<18x24x128xf32, #tpu.memory_space<vmem>>)
    %c1_i32_18 = arith.constant 1 : i32
    %22 = arith.addi %c0_i32_7, %c1_i32_18 : i32
    %c1_i32_19 = arith.constant 1 : i32
    %23 = arith.cmpi slt, %22, %c1_i32_19 : i32
    %24 = arith.extui %23 : i1 to i32
    %c0_i32_20 = arith.constant 0 : i32
    %25 = arith.cmpi ne, %24, %c0_i32_20 : i32
    scf.if %25 {
      %c1_i32_70 = arith.constant 1 : i32
      %85 = arith.addi %c0_i32_7, %c1_i32_70 : i32
      %c1_i32_71 = arith.constant 1 : i32
      %86 = arith.subi %c1_i32_71, %15 : i32
      %c15_i32_72 = arith.constant 15 : i32
      %87 = arith.muli %85, %c15_i32_72 : i32
      %c0_i32_73 = arith.constant 0 : i32
      %c0_i32_74 = arith.constant 0 : i32
      %88 = tpu.memref_slice %arg1[%arg0, %87, %c0_i32_73, %c0_i32_74] : memref<1x18x24x128xf32, #tpu.memory_space<any>> -> memref<1x18x24x128xf32, #tpu.memory_space<any>>
      %89 = tpu.memref_squeeze %88 : memref<1x18x24x128xf32, #tpu.memory_space<any>> -> memref<18x24x128xf32, #tpu.memory_space<any>>
      %c0_i32_75 = arith.constant 0 : i32
      %c0_i32_76 = arith.constant 0 : i32
      %c0_i32_77 = arith.constant 0 : i32
      %90 = tpu.memref_slice %arg3[%86, %c0_i32_75, %c0_i32_76, %c0_i32_77] : memref<2x18x24x128xf32, #tpu.memory_space<vmem>> -> memref<1x18x24x128xf32, #tpu.memory_space<vmem>>
      %91 = tpu.memref_squeeze %90 : memref<1x18x24x128xf32, #tpu.memory_space<vmem>> -> memref<18x24x128xf32, #tpu.memory_space<vmem>>
      %92 = tpu.memref_slice %arg6[%86] : memref<2x!tpu.dma_semaphore, #tpu.memory_space<semaphore_mem>> -> memref<1x!tpu.dma_semaphore, #tpu.memory_space<semaphore_mem>>
      %93 = tpu.memref_squeeze %92 : memref<1x!tpu.dma_semaphore, #tpu.memory_space<semaphore_mem>> -> memref<!tpu.dma_semaphore, #tpu.memory_space<semaphore_mem>>
      tpu.enqueue_dma source(%89 : memref<18x24x128xf32, #tpu.memory_space<any>>) target(%91 : memref<18x24x128xf32, #tpu.memory_space<vmem>>) target_semaphore(%93 : memref<!tpu.dma_semaphore, #tpu.memory_space<semaphore_mem>>)
    } else {
    }
    %c2_i32_21 = arith.constant 2 : i32
    %26 = arith.cmpi sge, %c0_i32_7, %c2_i32_21 : i32
    %27 = arith.extui %26 : i1 to i32
    %c0_i32_22 = arith.constant 0 : i32
    %28 = arith.cmpi ne, %27, %c0_i32_22 : i32
    scf.if %28 {
      %c0_i32_70 = arith.constant 0 : i32
      %c0_i32_71 = arith.constant 0 : i32
      %c0_i32_72 = arith.constant 0 : i32
      %85 = tpu.memref_slice %arg4[%15, %c0_i32_70, %c0_i32_71, %c0_i32_72] : memref<2x15x16x128xf32, #tpu.memory_space<vmem>> -> memref<1x15x16x128xf32, #tpu.memory_space<vmem>>
      %86 = tpu.memref_squeeze %85 : memref<1x15x16x128xf32, #tpu.memory_space<vmem>> -> memref<15x16x128xf32, #tpu.memory_space<vmem>>
      %c0_i32_73 = arith.constant 0 : i32
      %c0_i32_74 = arith.constant 0 : i32
      %c0_i32_75 = arith.constant 0 : i32
      %87 = tpu.memref_slice %arg2[%arg0, %c0_i32_73, %c0_i32_74, %c0_i32_75] : memref<1x15x16x128xf32, #tpu.memory_space<any>> -> memref<1x15x16x128xf32, #tpu.memory_space<any>>
      %88 = tpu.memref_squeeze %87 : memref<1x15x16x128xf32, #tpu.memory_space<any>> -> memref<15x16x128xf32, #tpu.memory_space<any>>
      %89 = tpu.memref_slice %arg7[%15] : memref<2x!tpu.dma_semaphore, #tpu.memory_space<semaphore_mem>> -> memref<1x!tpu.dma_semaphore, #tpu.memory_space<semaphore_mem>>
      %90 = tpu.memref_squeeze %89 : memref<1x!tpu.dma_semaphore, #tpu.memory_space<semaphore_mem>> -> memref<!tpu.dma_semaphore, #tpu.memory_space<semaphore_mem>>
      tpu.wait_dma2 semaphore(%90 : memref<!tpu.dma_semaphore, #tpu.memory_space<semaphore_mem>>) src(%86 : memref<15x16x128xf32, #tpu.memory_space<vmem>>) dst(%88 : memref<15x16x128xf32, #tpu.memory_space<any>>)
    } else {
    }
    %29 = arith.index_cast %15 : i32 to index
    %c0 = arith.constant 0 : index
    %c0_23 = arith.constant 0 : index
    %c0_24 = arith.constant 0 : index
    %30 = vector.load %arg3[%29, %c0, %c0_23, %c0_24] : memref<2x18x24x128xf32, #tpu.memory_space<vmem>>, vector<1x15x24x128xf32>
    %31 = vector.shape_cast %30 : vector<1x15x24x128xf32> to vector<15x24x128xf32>
    %cst = arith.constant 1.250000e-01 : f32
    %32 = vector.broadcast %cst : f32 to vector<15x24x128xf32>
    %33 = arith.mulf %32, %31 : vector<15x24x128xf32>
    %34 = arith.index_cast %15 : i32 to index
    %c1 = arith.constant 1 : index
    %c0_25 = arith.constant 0 : index
    %c0_26 = arith.constant 0 : index
    %35 = vector.load %arg3[%34, %c1, %c0_25, %c0_26] : memref<2x18x24x128xf32, #tpu.memory_space<vmem>>, vector<1x15x24x128xf32>
    %36 = vector.shape_cast %35 : vector<1x15x24x128xf32> to vector<15x24x128xf32>
    %cst_27 = arith.constant 3.750000e-01 : f32
    %37 = vector.broadcast %cst_27 : f32 to vector<15x24x128xf32>
    %38 = arith.mulf %37, %36 : vector<15x24x128xf32>
    %39 = arith.addf %33, %38 : vector<15x24x128xf32>
    %40 = arith.index_cast %15 : i32 to index
    %c2 = arith.constant 2 : index
    %c0_28 = arith.constant 0 : index
    %c0_29 = arith.constant 0 : index
    %41 = vector.load %arg3[%40, %c2, %c0_28, %c0_29] : memref<2x18x24x128xf32, #tpu.memory_space<vmem>>, vector<1x15x24x128xf32>
    %42 = vector.shape_cast %41 : vector<1x15x24x128xf32> to vector<15x24x128xf32>
    %cst_30 = arith.constant 3.750000e-01 : f32
    %43 = vector.broadcast %cst_30 : f32 to vector<15x24x128xf32>
    %44 = arith.mulf %43, %42 : vector<15x24x128xf32>
    %45 = arith.addf %39, %44 : vector<15x24x128xf32>
    %46 = arith.index_cast %15 : i32 to index
    %c3 = arith.constant 3 : index
    %c0_31 = arith.constant 0 : index
    %c0_32 = arith.constant 0 : index
    %47 = vector.load %arg3[%46, %c3, %c0_31, %c0_32] : memref<2x18x24x128xf32, #tpu.memory_space<vmem>>, vector<1x15x24x128xf32>
    %48 = vector.shape_cast %47 : vector<1x15x24x128xf32> to vector<15x24x128xf32>
    %cst_33 = arith.constant 1.250000e-01 : f32
    %49 = vector.broadcast %cst_33 : f32 to vector<15x24x128xf32>
    %50 = arith.mulf %49, %48 : vector<15x24x128xf32>
    %51 = arith.addf %45, %50 : vector<15x24x128xf32>
    %c0_34 = arith.constant 0 : index
    %c0_35 = arith.constant 0 : index
    %c0_36 = arith.constant 0 : index
    %52 = vector.load %arg5[%c0_34, %c0_35, %c0_36] : memref<15x24x128xf32, #tpu.memory_space<vmem>>, vector<15x24x128xf32>
    tpu.vector_store %arg5[%c0_34, %c0_35, %c0_36], %51 {strides = array<i32>} : memref<15x24x128xf32, #tpu.memory_space<vmem>>, vector<15x24x128xf32>,
    %c0_37 = arith.constant 0 : index
    %c0_38 = arith.constant 0 : index
    %c0_39 = arith.constant 0 : index
    %53 = vector.load %arg5[%c0_37, %c0_38, %c0_39] : memref<15x24x128xf32, #tpu.memory_space<vmem>>, vector<15x16x128xf32>
    %cst_40 = arith.constant 1.250000e-01 : f32
    %54 = vector.broadcast %cst_40 : f32 to vector<15x16x128xf32>
    %55 = arith.mulf %54, %53 : vector<15x16x128xf32>
    %c0_41 = arith.constant 0 : index
    %c1_42 = arith.constant 1 : index
    %c0_43 = arith.constant 0 : index
    %56 = vector.load %arg5[%c0_41, %c1_42, %c0_43] : memref<15x24x128xf32, #tpu.memory_space<vmem>>, vector<15x16x128xf32>
    %cst_44 = arith.constant 3.750000e-01 : f32
    %57 = vector.broadcast %cst_44 : f32 to vector<15x16x128xf32>
    %58 = arith.mulf %57, %56 : vector<15x16x128xf32>
    %59 = arith.addf %55, %58 : vector<15x16x128xf32>
    %c0_45 = arith.constant 0 : index
    %c2_46 = arith.constant 2 : index
    %c0_47 = arith.constant 0 : index
    %60 = vector.load %arg5[%c0_45, %c2_46, %c0_47] : memref<15x24x128xf32, #tpu.memory_space<vmem>>, vector<15x16x128xf32>
    %cst_48 = arith.constant 3.750000e-01 : f32
    %61 = vector.broadcast %cst_48 : f32 to vector<15x16x128xf32>
    %62 = arith.mulf %61, %60 : vector<15x16x128xf32>
    %63 = arith.addf %59, %62 : vector<15x16x128xf32>
    %c0_49 = arith.constant 0 : index
    %c3_50 = arith.constant 3 : index
    %c0_51 = arith.constant 0 : index
    %64 = vector.load %arg5[%c0_49, %c3_50, %c0_51] : memref<15x24x128xf32, #tpu.memory_space<vmem>>, vector<15x16x128xf32>
    %cst_52 = arith.constant 1.250000e-01 : f32
    %65 = vector.broadcast %cst_52 : f32 to vector<15x16x128xf32>
    %66 = arith.mulf %65, %64 : vector<15x16x128xf32>
    %67 = arith.addf %63, %66 : vector<15x16x128xf32>
    %68 = arith.index_cast %15 : i32 to index
    %c0_53 = arith.constant 0 : index
    %c0_54 = arith.constant 0 : index
    %c0_55 = arith.constant 0 : index
    %69 = vector.load %arg4[%68, %c0_53, %c0_54, %c0_55] : memref<2x15x16x128xf32, #tpu.memory_space<vmem>>, vector<1x15x16x128xf32>
    %70 = vector.shape_cast %69 : vector<1x15x16x128xf32> to vector<15x16x128xf32>
    %71 = vector.shape_cast %67 : vector<15x16x128xf32> to vector<1x15x16x128xf32>
    tpu.vector_store %arg4[%68, %c0_53, %c0_54, %c0_55], %71 {strides = array<i32>} : memref<2x15x16x128xf32, #tpu.memory_space<vmem>>, vector<1x15x16x128xf32>,
    %c15_i32 = arith.constant 15 : i32
    %72 = arith.muli %c0_i32_7, %c15_i32 : i32
    %c0_i32_56 = arith.constant 0 : i32
    %c0_i32_57 = arith.constant 0 : i32
    %c0_i32_58 = arith.constant 0 : i32
    %73 = tpu.memref_slice %arg4[%15, %c0_i32_56, %c0_i32_57, %c0_i32_58] : memref<2x15x16x128xf32, #tpu.memory_space<vmem>> -> memref<1x15x16x128xf32, #tpu.memory_space<vmem>>
    %74 = tpu.memref_squeeze %73 : memref<1x15x16x128xf32, #tpu.memory_space<vmem>> -> memref<15x16x128xf32, #tpu.memory_space<vmem>>
    %c0_i32_59 = arith.constant 0 : i32
    %c0_i32_60 = arith.constant 0 : i32
    %75 = tpu.memref_slice %arg2[%arg0, %72, %c0_i32_59, %c0_i32_60] : memref<1x15x16x128xf32, #tpu.memory_space<any>> -> memref<1x15x16x128xf32, #tpu.memory_space<any>>
    %76 = tpu.memref_squeeze %75 : memref<1x15x16x128xf32, #tpu.memory_space<any>> -> memref<15x16x128xf32, #tpu.memory_space<any>>
    %77 = tpu.memref_slice %arg7[%15] : memref<2x!tpu.dma_semaphore, #tpu.memory_space<semaphore_mem>> -> memref<1x!tpu.dma_semaphore, #tpu.memory_space<semaphore_mem>>
    %78 = tpu.memref_squeeze %77 : memref<1x!tpu.dma_semaphore, #tpu.memory_space<semaphore_mem>> -> memref<!tpu.dma_semaphore, #tpu.memory_space<semaphore_mem>>
    tpu.enqueue_dma source(%74 : memref<15x16x128xf32, #tpu.memory_space<vmem>>) target(%76 : memref<15x16x128xf32, #tpu.memory_space<any>>) target_semaphore(%78 : memref<!tpu.dma_semaphore, #tpu.memory_space<semaphore_mem>>)
    %c1_i32_61 = arith.constant 1 : i32
    %c0_i32_62 = arith.constant 0 : i32
    %c0_i32_63 = arith.constant 0 : i32
    %c0_i32_64 = arith.constant 0 : i32
    %c0_i32_65 = arith.constant 0 : i32
    %c0_i32_66 = arith.constant 0 : i32
    %79 = tpu.memref_slice %arg4[%c0_i32_62, %c0_i32_64, %c0_i32_65, %c0_i32_66] : memref<2x15x16x128xf32, #tpu.memory_space<vmem>> -> memref<1x15x16x128xf32, #tpu.memory_space<vmem>>
    %80 = tpu.memref_squeeze %79 : memref<1x15x16x128xf32, #tpu.memory_space<vmem>> -> memref<15x16x128xf32, #tpu.memory_space<vmem>>
    %c0_i32_67 = arith.constant 0 : i32
    %c0_i32_68 = arith.constant 0 : i32
    %c0_i32_69 = arith.constant 0 : i32
    %81 = tpu.memref_slice %arg2[%arg0, %c0_i32_67, %c0_i32_68, %c0_i32_69] : memref<1x15x16x128xf32, #tpu.memory_space<any>> -> memref<1x15x16x128xf32, #tpu.memory_space<any>>
    %82 = tpu.memref_squeeze %81 : memref<1x15x16x128xf32, #tpu.memory_space<any>> -> memref<15x16x128xf32, #tpu.memory_space<any>>
    %83 = tpu.memref_slice %arg7[%c0_i32_63] : memref<2x!tpu.dma_semaphore, #tpu.memory_space<semaphore_mem>> -> memref<1x!tpu.dma_semaphore, #tpu.memory_space<semaphore_mem>>
    %84 = tpu.memref_squeeze %83 : memref<1x!tpu.dma_semaphore, #tpu.memory_space<semaphore_mem>> -> memref<!tpu.dma_semaphore, #tpu.memory_space<semaphore_mem>>
    tpu.wait_dma2 semaphore(%84 : memref<!tpu.dma_semaphore, #tpu.memory_space<semaphore_mem>>) src(%80 : memref<15x16x128xf32, #tpu.memory_space<vmem>>) dst(%82 : memref<15x16x128xf32, #tpu.memory_space<any>>)
    return
  }
}

</mosaic_0001>

<bundles_post_ra>
// kernel: tpu_custom_call.1
= control target key start
LH: loop header
LB: loop body
LE: loop exit
PB: predicated region body
PF: predicated region fallthrough
CT: control target
= control target key end

     0   :  { %s1025_s6 = smov [#allocation2]   ;;  %s1193_s0 = inlined_call_operand.hbm [shape: f32[1,18,24,128], index: 0, kind: input, shape index: {}]   ;;  %s1194_s1 = inlined_call_operand.hbm [shape: f32[1,15,16,128], index: 1, kind: output, shape index: {}]  }
   0x1   :  { %s16_s7 = sshll.u32 %s1025_s6, 4  ;;  %s977_s10 = scalar_lea.hbm %s1193_s0, 6912  ;;  %s17_s7 = int_to_ptr.vmem [resolvable:$true] %s16_s7 }
   0x2   :  { %p978_p0 = scmp.ne.s32.totalorder %s1193_s0, %s977_s10  ;;  %p981_p1 = scmp.lt.u32.totalorder %s977_s10, %s1193_s0 }
   0x4   :  { %p983_p2 = pnand %p981_p1, %p978_p0 }
   0x6   :  { %986 = shalt.err (!%p983_p2)  }
   0x7   :  { %s987_s15 = scalar_lea.vmem %s17_s7, 6912  ;;  %s991_s16 = scalar_lea.vmem %s17_s7, 13824 }
   0x8   :  { %p988_p3 = scmp.ne.s32.totalorder %s17_s7, %s987_s15  ;;  %p992_p4 = scmp.lt.s32.totalorder %s17_s7, %s17_s7 }
   0x9   :  { %p993_p5 = scmp.lt.s32.totalorder %s991_s16, %s987_s15 }
   0xb   :  { %p994_p6 = por %p993_p5, %p992_p4 }
   0xd   :  { %p995_p7 = pnand %p994_p6, %p988_p3 }
   0xf   :  { %998 = shalt.err (!%p995_p7)  }
  0x10   :  { %19 = dma.hbm_to_vmem [thread:$0]  %s1193_s0, 6912, %s17_s7, [#allocation5] }
  0x11   :  { %1021 = dma.done.wait [#allocation5], 6912 }
  0x12   :  { %1022 = vsyncadd [#allocation5], 4294960384  ;;  %v24_v0 = vld [vmem:[#allocation2] sm:$0xff]  ;;  %v115_v1 = vld [vmem:[#allocation2 + $0x18] sm:$0xff]  ;;  %s1026_s0 = smov [#allocation3]  }
  0x13   :  { %v251_v2 = vld [vmem:[#allocation2 + $0x30] sm:$0xff]  ;;  %v69_v3 = vmul.f32 0.125, %v24_v0  ;;  %v160_v4 = vmul.f32 0.375, %v115_v1  ;;  %v387_v6 = vld [vmem:[#allocation2 + $0x48] sm:$0xff]  ;;  %v116_v8 = vld [vmem:[#allocation2 + $0x20] sm:$0xff]  ;;  %v72_v29 = vmul.f32 0.125, %v115_v1 }
  0x14   :  { %v296_v5 = vmul.f32 0.375, %v251_v2  ;;  %v25_v7 = vld [vmem:[#allocation2 + $0x8] sm:$0xff]  ;;  %v1049_v9 = vmul.f32 0.125, %v387_v6  ;;  %v161_v11 = vmul.f32 0.375, %v116_v8  ;;  %v252_v12 = vld [vmem:[#allocation2 + $0x38] sm:$0xff]  ;;  %v388_v13 = vld [vmem:[#allocation2 + $0x50] sm:$0xff] }
  0x15   :  { %v70_v10 = vmul.f32 0.125, %v25_v7  ;;  %v26_v14 = vld [vmem:[#allocation2 + $0x10] sm:$0xff]  ;;  %v205_v15 = vadd.f32 %v160_v4, %v69_v3  ;;  %v297_v16 = vmul.f32 0.375, %v252_v12  ;;  %v1051_v17 = vmul.f32 0.125, %v388_v13  ;;  %v117_v19 = vld [vmem:[#allocation2 + $0x28] sm:$0xff]  ;;  %v253_v20 = vld [vmem:[#allocation2 + $0x40] sm:$0xff] }
  0x16   :  { %v71_v18 = vmul.f32 0.125, %v26_v14  ;;  %v389_v21 = vld [vmem:[#allocation2 + $0x58] sm:$0xff]  ;;  %v162_v23 = vmul.f32 0.375, %v117_v19  ;;  %v298_v24 = vmul.f32 0.375, %v253_v20  ;;  %v390_v26 = vld [vmem:[#allocation2 + $0x60] sm:$0xff]  ;;  %v391_v27 = vld [vmem:[#allocation2 + $0x68] sm:$0xff]  ;;  %v208_v38 = vadd.f32 %v296_v5, %v72_v29 }
  0x17   :  { %v206_v22 = vadd.f32 %v161_v11, %v70_v10  ;;  %v1053_v25 = vmul.f32 0.125, %v389_v21  ;;  %v341_v28 = vadd.f32 %v296_v5, %v205_v15  ;;  %v299_v30 = vmul.f32 0.375, %v387_v6  ;;  %v392_v36 = vld [vmem:[#allocation2 + $0x70] sm:$0xff]  ;;  %v393_v41 = vld [vmem:[#allocation2 + $0x78] sm:$0xff]  ;;  %v394_v50 = vld [vmem:[#allocation2 + $0x80] sm:$0xff]  ;;  %s937_s19 = sshll.u32 %s1026_s0, 4  ;;  %s938_s19 = int_to_ptr.vmem [resolvable:$true] %s937_s19 }
  0x18   :  { %v1055_v31 = vmul.f32 0.125, %v390_v26  ;;  %v207_v33 = vadd.f32 %v162_v23, %v71_v18  ;;  %v73_v34 = vmul.f32 0.125, %v116_v8  ;;  %v300_v35 = vmul.f32 0.375, %v388_v13  ;;  %v395_v59 = vld [vmem:[#allocation2 + $0x88] sm:$0xff]  ;;  %v396_v0 = vld [vmem:[#allocation2 + $0x90] sm:$0xff]  ;;  %v397_v5 = vld [vmem:[#allocation2 + $0x98] sm:$0xff]  ;;  %p1004_p9 = scmp.lt.s32.totalorder %s938_s19, %s938_s19 }
  0x19   :  { %v342_v32 = vadd.f32 %v297_v16, %v206_v22  ;;  %v477_v37 = vadd.f32 %v1049_v9, %v341_v28  ;;  %v1058_v39 = vmul.f32 0.125, %v391_v27  ;;  %v74_v40 = vmul.f32 0.125, %v117_v19  ;;  %v398_v11 = vld [vmem:[#allocation2 + $0xa0] sm:$0xff]  ;;  %s999_s20 = scalar_lea.vmem %s938_s19, 3840  ;;  %s1003_s21 = scalar_lea.vmem %s938_s19, 7680 }
  0x1a   :  { %v343_v43 = vadd.f32 %v298_v24, %v207_v33  ;;  %v209_v44 = vadd.f32 %v297_v16, %v73_v34  ;;  %v301_v45 = vmul.f32 0.375, %v389_v21  ;;  %v344_v46 = vadd.f32 %v299_v30, %v208_v38  ;;  %v399_v21 = vld [vmem:[#allocation2 + $0xa8] sm:$0xff]  ;;  %p1000_p8 = scmp.ne.s32.totalorder %s938_s19, %s999_s20  ;;  %p1005_p10 = scmp.lt.s32.totalorder %s1003_s21, %s999_s20 }
  0x1b   :  { %v478_v42 = vadd.f32 %v1051_v17, %v342_v32  ;;  %522 = vst [vmem:[#allocation4] sm:$0xff] %v477_v37  ;;  %v210_v47 = vadd.f32 %v298_v24, %v74_v40  ;;  %v1061_v48 = vmul.f32 0.125, %v392_v36  ;;  %v75_v49 = vmul.f32 0.125, %v251_v2 }
  0x1c   :  { %v479_v51 = vadd.f32 %v1053_v25, %v343_v43  ;;  %v345_v52 = vadd.f32 %v300_v35, %v209_v44  ;;  %v302_v53 = vmul.f32 0.375, %v390_v26  ;;  %v1064_v54 = vmul.f32 0.125, %v393_v41  ;;  %v400_v26 = vld [vmem:[#allocation2 + $0xb0] sm:$0xff]  ;;  %v403_v44 = vld [vmem:[#allocation2 + $0xc8] sm:$0xff]  ;;  %p1006_p11 = por %p1005_p10, %p1004_p9 }
  0x1d   :  { %523 = vst [vmem:[#allocation4 + $0x8] sm:$0xff] %v478_v42  ;;  %v480_v55 = vadd.f32 %v1055_v31, %v344_v46  ;;  %v346_v56 = vadd.f32 %v301_v45, %v210_v47  ;;  %v211_v57 = vadd.f32 %v299_v30, %v75_v49  ;;  %v76_v58 = vmul.f32 0.125, %v252_v12  ;;  %v401_v30 = vld [vmem:[#allocation2 + $0xb8] sm:$0xff]  ;;  %v404_v49 = vld [vmem:[#allocation2 + $0xd0] sm:$0xff] }
  0x1e   :  { %524 = vst [vmem:[#allocation4 + $0x10] sm:$0xff] %v479_v51  ;;  %v481_v60 = vadd.f32 %v1058_v39, %v345_v52  ;;  %v303_v61 = vmul.f32 0.375, %v391_v27  ;;  %v439_v62 = vmul.f32 0.125, %v394_v50  ;;  %v77_v63 = vmul.f32 0.125, %v253_v20  ;;  %p1007_p12 = pnand %p1006_p11, %p1000_p8 }
  0x1f   :  { %525 = vst [vmem:[#allocation4 + $0x18] sm:$0xff] %v480_v55  ;;  %v482_v1 = vadd.f32 %v1061_v48, %v346_v56  ;;  %v347_v2 = vadd.f32 %v302_v53, %v211_v57  ;;  %v212_v3 = vadd.f32 %v300_v35, %v76_v58  ;;  %v304_v4 = vmul.f32 0.375, %v392_v36  ;;  %v402_v36 = vld [vmem:[#allocation2 + $0xc0] sm:$0xff] }
  0x20   :  { %526 = vst [vmem:[#allocation4 + $0x20] sm:$0xff] %v481_v60  ;;  %v213_v6 = vadd.f32 %v301_v45, %v77_v63  ;;  %v440_v7 = vmul.f32 0.125, %v395_v59  ;;  %v214_v8 = vadd.f32 %v1049_v9, %v302_v53  ;;  %v305_v10 = vmul.f32 0.375, %v393_v41  ;;  %v406_v63 = vld [vmem:[#allocation2 + $0xe0] sm:$0xff] }
  0x21   :  { %527 = vst [vmem:[#allocation4 + $0x28] sm:$0xff] %v482_v1  ;;  %v1071_v12 = vadd.f32 %v1064_v54, %v347_v2  ;;  %v348_v13 = vadd.f32 %v303_v61, %v212_v3  ;;  %v441_v14 = vmul.f32 0.125, %v396_v0  ;;  %v215_v15 = vadd.f32 %v1051_v17, %v303_v61  ;;  %v407_v3 = vld [vmem:[#allocation2 + $0xe8] sm:$0xff] }
  0x22   :  { %v349_v16 = vadd.f32 %v304_v4, %v213_v6  ;;  %v350_v18 = vadd.f32 %v305_v10, %v214_v8  ;;  %v306_v19 = vmul.f32 0.375, %v394_v50  ;;  %v442_v20 = vmul.f32 0.125, %v397_v5  ;;  %v408_v8 = vld [vmem:[#allocation2 + $0xf0] sm:$0xff] }
  0x23   :  { %528 = vst [vmem:[#allocation4 + $0x30] sm:$0xff] %v1071_v12  ;;  %v1075_v22 = vadd.f32 %v439_v62, %v348_v13  ;;  %v216_v9 = vadd.f32 %v1053_v25, %v304_v4  ;;  %v307_v23 = vmul.f32 0.375, %v395_v59  ;;  %v443_v24 = vmul.f32 0.125, %v398_v11 }
  0x24   :  { %v485_v27 = vadd.f32 %v440_v7, %v349_v16  ;;  %v1078_v28 = vadd.f32 %v441_v14, %v350_v18  ;;  %v351_v29 = vadd.f32 %v306_v19, %v215_v15  ;;  %v217_v17 = vadd.f32 %v1055_v31, %v305_v10  ;;  %v409_v16 = vld [vmem:[#allocation2 + $0xf8] sm:$0xff] }
  0x25   :  { %529 = vst [vmem:[#allocation4 + $0x38] sm:$0xff] %v1075_v22  ;;  %v352_v32 = vadd.f32 %v307_v23, %v216_v9  ;;  %v308_v33 = vmul.f32 0.375, %v396_v0  ;;  %v444_v34 = vmul.f32 0.125, %v399_v21  ;;  %v218_v35 = vadd.f32 %v1058_v39, %v306_v19 }
  0x26   :  { %530 = vst [vmem:[#allocation4 + $0x40] sm:$0xff] %v485_v27  ;;  %531 = vst [vmem:[#allocation4 + $0x48] sm:$0xff] %v1078_v28  ;;  %v1084_v25 = vadd.f32 %v442_v20, %v351_v29  ;;  %v309_v37 = vmul.f32 0.375, %v397_v5  ;;  %v445_v38 = vmul.f32 0.125, %v400_v26  ;;  %v219_v40 = vadd.f32 %v1061_v48, %v307_v23  ;;  %v405_v48 = vld [vmem:[#allocation2 + $0xd8] sm:$0xff]  ;;  %v410_v27 = vld [vmem:[#allocation2 + $0x100] sm:$0xff] }
  0x27   :  { %v488_v41 = vadd.f32 %v443_v24, %v352_v32  ;;  %v353_v31 = vadd.f32 %v308_v33, %v217_v17  ;;  %v310_v42 = vmul.f32 0.375, %v398_v11  ;;  %v446_v43 = vmul.f32 0.125, %v401_v30  ;;  %v411_v32 = vld [vmem:[#allocation2 + $0x108] sm:$0xff] }
  0x28   :  { %532 = vst [vmem:[#allocation4 + $0x50] sm:$0xff] %v1084_v25  ;;  %v354_v45 = vadd.f32 %v309_v37, %v218_v35  ;;  %v220_v39 = vadd.f32 %v1064_v54, %v308_v33  ;;  %v311_v46 = vmul.f32 0.375, %v399_v21  ;;  %v447_v47 = vmul.f32 0.125, %v402_v36 }
  0x29   :  { %533 = vst [vmem:[#allocation4 + $0x58] sm:$0xff] %v488_v41  ;;  %v1089_v50 = vadd.f32 %v444_v34, %v353_v31  ;;  %v355_v51 = vadd.f32 %v310_v42, %v219_v40  ;;  %v221_v52 = vadd.f32 %v439_v62, %v309_v37  ;;  %v312_v53 = vmul.f32 0.375, %v400_v26 }
  0x2a   :  { %v1091_v55 = vadd.f32 %v445_v38, %v354_v45  ;;  %v356_v56 = vadd.f32 %v311_v46, %v220_v39  ;;  %v448_v57 = vmul.f32 0.125, %v403_v44  ;;  %v222_v58 = vadd.f32 %v440_v7, %v310_v42 }
  0x2b   :  { %534 = vst [vmem:[#allocation4 + $0x60] sm:$0xff] %v1089_v50  ;;  %v491_v59 = vadd.f32 %v446_v43, %v355_v51  ;;  %v357_v60 = vadd.f32 %v312_v53, %v221_v52  ;;  %v313_v54 = vmul.f32 0.375, %v401_v30  ;;  %v449_v61 = vmul.f32 0.125, %v404_v49 }
  0x2c   :  { %535 = vst [vmem:[#allocation4 + $0x68] sm:$0xff] %v1091_v55  ;;  %v1095_v0 = vadd.f32 %v447_v47, %v356_v56  ;;  %v223_v1 = vadd.f32 %v441_v14, %v311_v46  ;;  %v314_v62 = vmul.f32 0.375, %v402_v36  ;;  %v450_v2 = vmul.f32 0.125, %v405_v48 }
  0x2d   :  { %536 = vst [vmem:[#allocation4 + $0x70] sm:$0xff] %v491_v59  ;;  %v1097_v4 = vadd.f32 %v448_v57, %v357_v60  ;;  %v358_v5 = vadd.f32 %v313_v54, %v222_v58  ;;  %v224_v6 = vadd.f32 %v442_v20, %v312_v53  ;;  %v315_v7 = vmul.f32 0.375, %v403_v44  ;;  %v413_v44 = vld [vmem:[#allocation2 + $0x118] sm:$0xff]  ;;  %v414_v53 = vld [vmem:[#allocation2 + $0x120] sm:$0xff]  ;;  %v415_v59 = vld [vmem:[#allocation2 + $0x128] sm:$0xff] }
  0x2e   :  { %537 = vst [vmem:[#allocation4 + $0x78] sm:$0xff] %v1095_v0  ;;  %v359_v10 = vadd.f32 %v314_v62, %v223_v1  ;;  %v451_v11 = vmul.f32 0.125, %v406_v63  ;;  %v225_v13 = vadd.f32 %v443_v24, %v313_v54  ;;  %v316_v15 = vmul.f32 0.375, %v404_v49  ;;  %v416_v1 = vld [vmem:[#allocation2 + $0x130] sm:$0xff] }
  0x2f   :  { %538 = vst [vmem:[#allocation4 + $0x80] sm:$0xff] %v1097_v4  ;;  %v494_v14 = vadd.f32 %v449_v61, %v358_v5  ;;  %v360_v18 = vadd.f32 %v315_v7, %v224_v6  ;;  %v452_v19 = vmul.f32 0.125, %v407_v3  ;;  %v226_v21 = vadd.f32 %v444_v34, %v314_v62  ;;  %v412_v34 = vld [vmem:[#allocation2 + $0x110] sm:$0xff] }
  0x30   :  { %v1101_v9 = vadd.f32 %v450_v2, %v359_v10  ;;  %v361_v23 = vadd.f32 %v316_v15, %v225_v13  ;;  %v317_v26 = vmul.f32 0.375, %v405_v48  ;;  %v453_v20 = vmul.f32 0.125, %v408_v8 }
  0x31   :  { %539 = vst [vmem:[#allocation4 + $0x88] sm:$0xff] %v494_v14  ;;  %v1103_v29 = vadd.f32 %v451_v11, %v360_v18  ;;  %v227_v17 = vadd.f32 %v445_v38, %v315_v7  ;;  %v318_v30 = vmul.f32 0.375, %v406_v63  ;;  %v454_v24 = vmul.f32 0.125, %v409_v16  ;;  %v417_v7 = vld [vmem:[#allocation2 + $0x138] sm:$0xff] }
  0x32   :  { %540 = vst [vmem:[#allocation4 + $0x90] sm:$0xff] %v1101_v9  ;;  %v497_v33 = vadd.f32 %v452_v19, %v361_v23  ;;  %v362_v35 = vadd.f32 %v317_v26, %v226_v21  ;;  %v228_v36 = vadd.f32 %v446_v43, %v316_v15  ;;  %v319_v37 = vmul.f32 0.375, %v407_v3 }
  0x33   :  { %541 = vst [vmem:[#allocation4 + $0x98] sm:$0xff] %v1103_v29  ;;  %v363_v40 = vadd.f32 %v318_v30, %v227_v17  ;;  %v455_v41 = vmul.f32 0.125, %v410_v27  ;;  %v229_v31 = vadd.f32 %v447_v47, %v317_v26  ;;  %v320_v42 = vmul.f32 0.375, %v408_v8 }
  0x34   :  { %542 = vst [vmem:[#allocation4 + $0xa0] sm:$0xff] %v497_v33  ;;  %v1107_v45 = vadd.f32 %v453_v20, %v362_v35  ;;  %v364_v38 = vadd.f32 %v319_v37, %v228_v36  ;;  %v456_v39 = vmul.f32 0.125, %v411_v32  ;;  %v230_v46 = vadd.f32 %v448_v57, %v318_v30 }
  0x35   :  { %v1109_v49 = vadd.f32 %v454_v24, %v363_v40  ;;  %v365_v51 = vadd.f32 %v320_v42, %v229_v31  ;;  %v321_v52 = vmul.f32 0.375, %v409_v16  ;;  %v457_v43 = vmul.f32 0.125, %v412_v34  ;;  %v421_v40 = vld [vmem:[#allocation2 + $0x158] sm:$0xff] }
  0x36   :  { %543 = vst [vmem:[#allocation4 + $0xa8] sm:$0xff] %v1107_v45  ;;  %v500_v48 = vadd.f32 %v455_v41, %v364_v38  ;;  %v231_v56 = vadd.f32 %v449_v61, %v319_v37  ;;  %v322_v58 = vmul.f32 0.375, %v410_v27  ;;  %v458_v47 = vmul.f32 0.125, %v413_v44  ;;  %v419_v27 = vld [vmem:[#allocation2 + $0x148] sm:$0xff] }
  0x37   :  { %544 = vst [vmem:[#allocation4 + $0xb0] sm:$0xff] %v1109_v49  ;;  %v1113_v60 = vadd.f32 %v456_v39, %v365_v51  ;;  %v366_v54 = vadd.f32 %v321_v52, %v230_v46  ;;  %v232_v63 = vadd.f32 %v450_v2, %v320_v42  ;;  %v323_v57 = vmul.f32 0.375, %v411_v32  ;;  %v418_v2 = vld [vmem:[#allocation2 + $0x140] sm:$0xff] }
  0x38   :  { %545 = vst [vmem:[#allocation4 + $0xb8] sm:$0xff] %v500_v48  ;;  %v367_v62 = vadd.f32 %v322_v58, %v231_v56  ;;  %v459_v3 = vmul.f32 0.125, %v414_v53  ;;  %v233_v5 = vadd.f32 %v451_v11, %v321_v52  ;;  %v324_v6 = vmul.f32 0.375, %v412_v34  ;;  %v422_v52 = vld [vmem:[#allocation2 + $0x160] sm:$0xff] }
  0x39   :  { %546 = vst [vmem:[#allocation4 + $0xc0] sm:$0xff] %v1113_v60  ;;  %v1116_v61 = vadd.f32 %v457_v43, %v366_v54  ;;  %v368_v8 = vadd.f32 %v323_v57, %v232_v63  ;;  %v460_v10 = vmul.f32 0.125, %v415_v59  ;;  %v234_v13 = vadd.f32 %v452_v19, %v322_v58  ;;  %v420_v19 = vld [vmem:[#allocation2 + $0x150] sm:$0xff] }
  0x3a   :  { %v503_v15 = vadd.f32 %v458_v47, %v367_v62  ;;  %v369_v16 = vadd.f32 %v324_v6, %v233_v5  ;;  %v325_v14 = vmul.f32 0.375, %v413_v44  ;;  %v461_v18 = vmul.f32 0.125, %v416_v1  ;;  %v423_v5 = vld [vmem:[#allocation2 + $0x168] sm:$0xff] }
  0x3b   :  { %547 = vst [vmem:[#allocation4 + $0xc8] sm:$0xff] %v1116_v61  ;;  %v1119_v21 = vadd.f32 %v459_v3, %v368_v8  ;;  %v235_v23 = vadd.f32 %v453_v20, %v323_v57  ;;  %v326_v11 = vmul.f32 0.375, %v414_v53  ;;  %v462_v26 = vmul.f32 0.125, %v417_v7 }
  0x3c   :  { %548 = vst [vmem:[#allocation4 + $0xd0] sm:$0xff] %v503_v15  ;;  %v1121_v17 = vadd.f32 %v460_v10, %v369_v16  ;;  %v370_v30 = vadd.f32 %v325_v14, %v234_v13  ;;  %v236_v32 = vadd.f32 %v454_v24, %v324_v6  ;;  %v327_v33 = vmul.f32 0.375, %v415_v59  ;;  %v424_v13 = vld [vmem:[#allocation2 + $0x170] sm:$0xff] }
  0x3d   :  { %549 = vst [vmem:[#allocation4 + $0xd8] sm:$0xff] %v1119_v21  ;;  %v371_v35 = vadd.f32 %v326_v11, %v235_v23  ;;  %v463_v36 = vmul.f32 0.125, %v418_v2  ;;  %v237_v37 = vadd.f32 %v455_v41, %v325_v14  ;;  %v328_v34 = vmul.f32 0.375, %v416_v1 }
  0x3e   :  { %550 = vst [vmem:[#allocation4 + $0xe0] sm:$0xff] %v1121_v17  ;;  %v506_v20 = vadd.f32 %v461_v18, %v370_v30  ;;  %v372_v31 = vadd.f32 %v327_v33, %v236_v32  ;;  %v464_v42 = vmul.f32 0.125, %v419_v27  ;;  %v238_v44 = vadd.f32 %v456_v39, %v326_v11 }
  0x3f   :  { %v1125_v38 = vadd.f32 %v462_v26, %v371_v35  ;;  %v373_v46 = vadd.f32 %v328_v34, %v237_v37  ;;  %v329_v51 = vmul.f32 0.375, %v417_v7  ;;  %v465_v24 = vmul.f32 0.125, %v420_v19 }
  0x40   :  { %551 = vst [vmem:[#allocation4 + $0xe8] sm:$0xff] %v506_v20  ;;  %v1127_v53 = vadd.f32 %v463_v36, %v372_v31  ;;  %v239_v48 = vadd.f32 %v457_v43, %v327_v33  ;;  %v330_v56 = vmul.f32 0.375, %v418_v2  ;;  %v466_v41 = vmul.f32 0.125, %v421_v40  ;;  %v425_v2 = vld [vmem:[#allocation2 + $0x178] sm:$0xff]  ;;  %v427_v20 = vld [vmem:[#allocation2 + $0x188] sm:$0xff] }
  0x41   :  { %552 = vst [vmem:[#allocation4 + $0xf0] sm:$0xff] %v1125_v38  ;;  %v509_v58 = vadd.f32 %v464_v42, %v373_v46  ;;  %v374_v59 = vadd.f32 %v329_v51, %v238_v44  ;;  %v240_v54 = vadd.f32 %v458_v47, %v328_v34  ;;  %v331_v63 = vmul.f32 0.375, %v419_v27  ;;  %v429_v31 = vld [vmem:[#allocation2 + $0x198] sm:$0xff] }
  0x42   :  { %553 = vst [vmem:[#allocation4 + $0xf8] sm:$0xff] %v1127_v53  ;;  %v375_v39 = vadd.f32 %v330_v56, %v239_v48  ;;  %v467_v57 = vmul.f32 0.125, %v422_v52  ;;  %v241_v1 = vadd.f32 %v459_v3, %v329_v51  ;;  %v332_v62 = vmul.f32 0.375, %v420_v19  ;;  %v426_v19 = vld [vmem:[#allocation2 + $0x180] sm:$0xff] }
  0x43   :  { %554 = vst [vmem:[#allocation4 + $0x100] sm:$0xff] %v509_v58  ;;  %v1131_v6 = vadd.f32 %v465_v24, %v374_v59  ;;  %v376_v7 = vadd.f32 %v331_v63, %v240_v54  ;;  %v468_v43 = vmul.f32 0.125, %v423_v5  ;;  %v242_v8 = vadd.f32 %v460_v10, %v330_v56  ;;  %v430_v59 = vld [vmem:[#allocation2 + $0x1a0] sm:$0xff] }
  0x44   :  { %v1133_v15 = vadd.f32 %v466_v41, %v375_v39  ;;  %v377_v16 = vadd.f32 %v332_v62, %v241_v1  ;;  %v333_v14 = vmul.f32 0.375, %v421_v40  ;;  %v469_v47 = vmul.f32 0.125, %v424_v13  ;;  %v431_v1 = vld [vmem:[#allocation2 + $0x1a8] sm:$0xff] }
  0x45   :  { %555 = vst [vmem:[#allocation4 + $0x108] sm:$0xff] %v1131_v6  ;;  %v512_v23 = vadd.f32 %v467_v57, %v376_v7  ;;  %v243_v11 = vadd.f32 %v461_v18, %v331_v63  ;;  %v334_v3 = vmul.f32 0.375, %v422_v52  ;;  %v470_v27 = vmul.f32 0.125, %v425_v2  ;;  %v428_v52 = vld [vmem:[#allocation2 + $0x190] sm:$0xff] }
  0x46   :  { %556 = vst [vmem:[#allocation4 + $0x110] sm:$0xff] %v1133_v15  ;;  %v1137_v30 = vadd.f32 %v468_v43, %v377_v16  ;;  %v378_v32 = vadd.f32 %v333_v14, %v242_v8  ;;  %v244_v33 = vadd.f32 %v462_v26, %v332_v62  ;;  %v335_v10 = vmul.f32 0.375, %v423_v5  ;;  %v567_v62 = vld [vmem:[#allocation4] sm:$0xff] }
  0x47   :  { %557 = vst [vmem:[#allocation4 + $0x118] sm:$0xff] %v512_v23  ;;  %v379_v35 = vadd.f32 %v334_v3, %v243_v11  ;;  %v471_v37 = vmul.f32 0.125, %v426_v19  ;;  %v245_v34 = vadd.f32 %v463_v36, %v333_v14  ;;  %v336_v40 = vmul.f32 0.375, %v424_v13  ;;  %v627_v8 = vld [vmem:[#allocation4 + $0x1] sm:$0xff] }
  0x48   :  { %558 = vst [vmem:[#allocation4 + $0x120] sm:$0xff] %v1137_v30  ;;  %v1140_v18 = vadd.f32 %v469_v47, %v378_v32  ;;  %v380_v44 = vadd.f32 %v335_v10, %v244_v33  ;;  %v472_v46 = vmul.f32 0.125, %v427_v20  ;;  %v246_v51 = vadd.f32 %v464_v42, %v334_v3  ;;  %v568_v23 = vld [vmem:[#allocation4 + $0x8] sm:$0xff] }
  0x49   :  { %v515_v48 = vadd.f32 %v470_v27, %v379_v35  ;;  %v381_v56 = vadd.f32 %v336_v40, %v245_v34  ;;  %v337_v26 = vmul.f32 0.375, %v425_v2  ;;  %v473_v58 = vmul.f32 0.125, %v428_v52  ;;  %v717_v2 = vld [vmem:[#allocation4 + $0x2] sm:$0xff]  ;;  %v569_v34 = vld [vmem:[#allocation4 + $0x18] sm:$0xff] }
  0x4a   :  { %559 = vst [vmem:[#allocation4 + $0x128] sm:$0xff] %v1140_v18  ;;  %v1143_v54 = vadd.f32 %v471_v37, %v380_v44  ;;  %v247_v36 = vadd.f32 %v465_v24, %v335_v10  ;;  %v338_v63 = vmul.f32 0.375, %v426_v19  ;;  %v474_v39 = vmul.f32 0.125, %v429_v31  ;;  %v628_v24 = vld [vmem:[#allocation4 + $0x9] sm:$0xff] }
  0x4b   :  { %560 = vst [vmem:[#allocation4 + $0x130] sm:$0xff] %v515_v48  ;;  %v1145_v5 = vadd.f32 %v472_v46, %v381_v56  ;;  %v382_v7 = vadd.f32 %v337_v26, %v246_v51  ;;  %v248_v42 = vadd.f32 %v466_v41, %v336_v40  ;;  %v339_v43 = vmul.f32 0.375, %v427_v20  ;;  %v807_v33 = vld [vmem:[#allocation4 + $0x3] sm:$0xff]  ;;  %v808_v37 = vld [vmem:[#allocation4 + $0xb] sm:$0xff]  ;;  %v629_v40 = vld [vmem:[#allocation4 + $0x19] sm:$0xff] }
  0x4c   :  { %561 = vst [vmem:[#allocation4 + $0x138] sm:$0xff] %v1143_v54  ;;  %v383_v13 = vadd.f32 %v338_v63, %v247_v36  ;;  %v475_v16 = vmul.f32 0.125, %v430_v59  ;;  %v249_v14 = vadd.f32 %v467_v57, %v337_v26  ;;  %v340_v47 = vmul.f32 0.375, %v428_v52  ;;  %v718_v10 = vld [vmem:[#allocation4 + $0xa] sm:$0xff]  ;;  %v719_v46 = vld [vmem:[#allocation4 + $0x1a] sm:$0xff]  ;;  %v720_v36 = vld [vmem:[#allocation4 + $0x22] sm:$0xff] }
  0x4d   :  { %562 = vst [vmem:[#allocation4 + $0x140] sm:$0xff] %v1145_v5  ;;  %v518_v11 = vadd.f32 %v473_v58, %v382_v7  ;;  %v384_v3 = vadd.f32 %v339_v43, %v248_v42  ;;  %v476_v27 = vmul.f32 0.125, %v431_v1  ;;  %v597_v32 = vmul.f32 0.125, %v567_v62  ;;  %v570_v51 = vld [vmem:[#allocation4 + $0x20] sm:$0xff]  ;;  %v631_v7 = vld [vmem:[#allocation4 + $0x31] sm:$0xff] }
  0x4e   :  { %v1149_v41 = vadd.f32 %v474_v39, %v383_v13  ;;  %v385_v19 = vadd.f32 %v340_v47, %v249_v14  ;;  %v657_v35 = vmul.f32 0.375, %v627_v8  ;;  %v747_v20 = vmul.f32 0.375, %v717_v2  ;;  %v630_v52 = vld [vmem:[#allocation4 + $0x21] sm:$0xff]  ;;  %v721_v14 = vld [vmem:[#allocation4 + $0x32] sm:$0xff] }
  0x4f   :  { %563 = vst [vmem:[#allocation4 + $0x148] sm:$0xff] %v518_v11  ;;  %v1151_v57 = vadd.f32 %v475_v16, %v384_v3  ;;  %v598_v31 = vmul.f32 0.125, %v568_v23  ;;  %v658_v44 = vmul.f32 0.375, %v628_v24  ;;  %v837_v26 = vmul.f32 0.125, %v807_v33  ;;  %v809_v59 = vld [vmem:[#allocation4 + $0x1b] sm:$0xff]  ;;  %v810_v16 = vld [vmem:[#allocation4 + $0x23] sm:$0xff] }
  0x50   :  { %564 = vst [vmem:[#allocation4 + $0x150] sm:$0xff] %v1149_v41  ;;  %v521_v48 = vadd.f32 %v476_v27, %v385_v19  ;;  %v687_v56 = vadd.f32 %v657_v35, %v597_v32  ;;  %v748_v58 = vmul.f32 0.375, %v718_v10  ;;  %v838_v39 = vmul.f32 0.125, %v808_v37  ;;  %v632_v11 = vld [vmem:[#allocation4 + $0x39] sm:$0xff] }
  0x51   :  { %565 = vst [vmem:[#allocation4 + $0x158] sm:$0xff] %v1151_v57  ;;  %v688_v63 = vadd.f32 %v658_v44, %v598_v31  ;;  %v599_v1 = vmul.f32 0.125, %v569_v34  ;;  %v659_v62 = vmul.f32 0.375, %v629_v40  ;;  %v749_v43 = vmul.f32 0.375, %v719_v46  ;;  %v811_v10 = vld [vmem:[#allocation4 + $0x33] sm:$0xff] }
  0x52   :  { %566 = vst [vmem:[#allocation4 + $0x160] sm:$0xff] %v521_v48  ;;  %v777_v42 = vadd.f32 %v747_v20, %v687_v56  ;;  %v600_v8 = vmul.f32 0.125, %v570_v51  ;;  %v660_v13 = vmul.f32 0.375, %v630_v52  ;;  %v839_v23 = vmul.f32 0.125, %v809_v59  ;;  %v722_v19 = vld [vmem:[#allocation4 + $0x3a] sm:$0xff]  ;;  %v633_v20 = vld [vmem:[#allocation4 + $0x49] sm:$0xff] }
  0x53   :  { %v778_v47 = vadd.f32 %v748_v58, %v688_v63  ;;  %v689_v2 = vadd.f32 %v659_v62, %v599_v1  ;;  %v750_v24 = vmul.f32 0.375, %v720_v36  ;;  %v601_v32 = vmul.f32 0.125, %v1071_v12  ;;  %v812_v52 = vld [vmem:[#allocation4 + $0x3b] sm:$0xff]  ;;  %v723_v48 = vld [vmem:[#allocation4 + $0x4a] sm:$0xff] }
  0x54   :  { %v867_v3 = vadd.f32 %v837_v26, %v777_v42  ;;  %v690_v27 = vadd.f32 %v660_v13, %v600_v8  ;;  %v661_v33 = vmul.f32 0.375, %v631_v7  ;;  %v840_v34 = vmul.f32 0.125, %v810_v16  ;;  %v634_v56 = vld [vmem:[#allocation4 + $0x51] sm:$0xff]  ;;  %v635_v42 = vld [vmem:[#allocation4 + $0x61] sm:$0xff] }
  0x55   :  { %v868_v35 = vadd.f32 %v838_v39, %v778_v47  ;;  %v779_v37 = vadd.f32 %v749_v43, %v689_v2  ;;  %v751_v40 = vmul.f32 0.375, %v721_v14  ;;  %v602_v46 = vmul.f32 0.125, %v1075_v22  ;;  %v813_v36 = vld [vmem:[#allocation4 + $0x4b] sm:$0xff]  ;;  %v814_v16 = vld [vmem:[#allocation4 + $0x53] sm:$0xff]  ;;  %v725_v14 = vld [vmem:[#allocation4 + $0x62] sm:$0xff] }
  0x56   :  { %897 = vst [vmem:[#allocation3] sm:$0xff] %v867_v3  ;;  %v780_v31 = vadd.f32 %v750_v24, %v690_v27  ;;  %v691_v44 = vadd.f32 %v661_v33, %v601_v32  ;;  %v662_v51 = vmul.f32 0.375, %v632_v11  ;;  %v841_v12 = vmul.f32 0.125, %v811_v10  ;;  %v724_v7 = vld [vmem:[#allocation4 + $0x52] sm:$0xff]  ;;  %v636_v24 = vld [vmem:[#allocation4 + $0x69] sm:$0xff] }
  0x57   :  { %898 = vst [vmem:[#allocation3 + $0x8] sm:$0xff] %v868_v35  ;;  %v869_v26 = vadd.f32 %v839_v23, %v779_v37  ;;  %v752_v58 = vmul.f32 0.375, %v722_v19  ;;  %v603_v59 = vmul.f32 0.125, %v1078_v28  ;;  %v663_v62 = vmul.f32 0.375, %v633_v20  ;;  %v815_v33 = vld [vmem:[#allocation4 + $0x63] sm:$0xff] }
  0x58   :  { %v870_v63 = vadd.f32 %v840_v34, %v780_v31  ;;  %v781_v39 = vadd.f32 %v751_v40, %v691_v44  ;;  %v692_v1 = vadd.f32 %v662_v51, %v602_v46  ;;  %v842_v43 = vmul.f32 0.125, %v812_v52  ;;  %v726_v10 = vld [vmem:[#allocation4 + $0x6a] sm:$0xff]  ;;  %v637_v34 = vld [vmem:[#allocation4 + $0x79] sm:$0xff]  ;;  %v638_v52 = vld [vmem:[#allocation4 + $0x81] sm:$0xff] }
  0x59   :  { %899 = vst [vmem:[#allocation3 + $0x10] sm:$0xff] %v869_v26  ;;  %v753_v22 = vmul.f32 0.375, %v723_v48  ;;  %v604_v8 = vmul.f32 0.125, %v1084_v25  ;;  %v664_v13 = vmul.f32 0.375, %v634_v56  ;;  %v693_v23 = vadd.f32 %v663_v62, %v603_v59  ;;  %v816_v46 = vld [vmem:[#allocation4 + $0x6b] sm:$0xff]  ;;  %v727_v51 = vld [vmem:[#allocation4 + $0x7a] sm:$0xff] }
  0x5a   :  { %900 = vst [vmem:[#allocation3 + $0x18] sm:$0xff] %v870_v63  ;;  %v871_v47 = vadd.f32 %v841_v12, %v781_v39  ;;  %v782_v2 = vadd.f32 %v752_v58, %v692_v1  ;;  %v843_v28 = vmul.f32 0.125, %v813_v36  ;;  %v754_v3 = vmul.f32 0.375, %v724_v7  ;;  %v817_v12 = vld [vmem:[#allocation4 + $0x7b] sm:$0xff]  ;;  %v639_v1 = vld [vmem:[#allocation4 + $0x91] sm:$0xff] }
  0x5b   :  { %v694_v11 = vadd.f32 %v664_v13, %v604_v8  ;;  %v605_v27 = vmul.f32 0.125, %v1089_v50  ;;  %v665_v32 = vmul.f32 0.375, %v635_v42  ;;  %v783_v35 = vadd.f32 %v753_v22, %v693_v23  ;;  %v728_v39 = vld [vmem:[#allocation4 + $0x82] sm:$0xff]  ;;  %v729_v22 = vld [vmem:[#allocation4 + $0x92] sm:$0xff] }
  0x5c   :  { %901 = vst [vmem:[#allocation3 + $0x20] sm:$0xff] %v871_v47  ;;  %v872_v19 = vadd.f32 %v842_v43, %v782_v2  ;;  %v844_v25 = vmul.f32 0.125, %v814_v16  ;;  %v755_v37 = vmul.f32 0.375, %v725_v14  ;;  %v606_v31 = vmul.f32 0.125, %v1091_v55  ;;  %v818_v43 = vld [vmem:[#allocation4 + $0x83] sm:$0xff]  ;;  %v640_v14 = vld [vmem:[#allocation4 + $0x99] sm:$0xff] }
  0x5d   :  { %v784_v40 = vadd.f32 %v754_v3, %v694_v11  ;;  %v695_v20 = vadd.f32 %v665_v32, %v605_v27  ;;  %v666_v44 = vmul.f32 0.375, %v636_v24  ;;  %v873_v48 = vadd.f32 %v843_v28, %v783_v35  ;;  %v819_v24 = vld [vmem:[#allocation4 + $0x93] sm:$0xff] }
  0x5e   :  { %902 = vst [vmem:[#allocation3 + $0x28] sm:$0xff] %v872_v19  ;;  %v845_v50 = vmul.f32 0.125, %v815_v33  ;;  %v756_v56 = vmul.f32 0.375, %v726_v10  ;;  %v607_v26 = vmul.f32 0.125, %v1095_v0  ;;  %v667_v63 = vmul.f32 0.375, %v637_v34  ;;  %v730_v11 = vld [vmem:[#allocation4 + $0x9a] sm:$0xff] }
  0x5f   :  { %v874_v58 = vadd.f32 %v844_v25, %v784_v40  ;;  %v785_v59 = vadd.f32 %v755_v37, %v695_v20  ;;  %v696_v36 = vadd.f32 %v666_v44, %v606_v31  ;;  %903 = vst [vmem:[#allocation3 + $0x30] sm:$0xff] %v873_v48  ;;  %v846_v62 = vmul.f32 0.125, %v816_v46  ;;  %v641_v33 = vld [vmem:[#allocation4 + $0xa9] sm:$0xff]  ;;  %v820_v37 = vld [vmem:[#allocation4 + $0x9b] sm:$0xff]  ;;  %v642_v40 = vld [vmem:[#allocation4 + $0xb1] sm:$0xff] }
  0x60   :  { %v757_v55 = vmul.f32 0.375, %v727_v51  ;;  %v608_v7 = vmul.f32 0.125, %v1097_v4  ;;  %v668_v42 = vmul.f32 0.375, %v638_v52  ;;  %v697_v16 = vadd.f32 %v667_v63, %v607_v26  ;;  %v731_v34 = vld [vmem:[#allocation4 + $0xaa] sm:$0xff]  ;;  %v643_v26 = vld [vmem:[#allocation4 + $0xc1] sm:$0xff] }
  0x61   :  { %904 = vst [vmem:[#allocation3 + $0x38] sm:$0xff] %v874_v58  ;;  %v875_v8 = vadd.f32 %v845_v50, %v785_v59  ;;  %v786_v13 = vadd.f32 %v756_v56, %v696_v36  ;;  %v847_v0 = vmul.f32 0.125, %v817_v12  ;;  %v758_v2 = vmul.f32 0.375, %v728_v39  ;;  %v821_v46 = vld [vmem:[#allocation4 + $0xab] sm:$0xff]  ;;  %v822_v36 = vld [vmem:[#allocation4 + $0xb3] sm:$0xff]  ;;  %v733_v63 = vld [vmem:[#allocation4 + $0xc2] sm:$0xff] }
  0x62   :  { %v698_v47 = vadd.f32 %v668_v42, %v608_v7  ;;  %v609_v23 = vmul.f32 0.125, %v1101_v9  ;;  %v669_v28 = vmul.f32 0.375, %v639_v1  ;;  %v787_v27 = vadd.f32 %v757_v55, %v697_v16  ;;  %v732_v56 = vld [vmem:[#allocation4 + $0xb2] sm:$0xff]  ;;  %v644_v55 = vld [vmem:[#allocation4 + $0xc9] sm:$0xff] }
  0x63   :  { %905 = vst [vmem:[#allocation3 + $0x40] sm:$0xff] %v875_v8  ;;  %v876_v3 = vadd.f32 %v846_v62, %v786_v13  ;;  %v848_v4 = vmul.f32 0.125, %v818_v43  ;;  %v759_v32 = vmul.f32 0.375, %v729_v22  ;;  %v610_v35 = vmul.f32 0.125, %v1103_v29  ;;  %v823_v8 = vld [vmem:[#allocation4 + $0xc3] sm:$0xff] }
  0x64   :  { %v788_v10 = vadd.f32 %v758_v2, %v698_v47  ;;  %v699_v19 = vadd.f32 %v669_v28, %v609_v23  ;;  %v670_v25 = vmul.f32 0.375, %v640_v14  ;;  %v877_v20 = vadd.f32 %v847_v0, %v787_v27  ;;  %v734_v13 = vld [vmem:[#allocation4 + $0xca] sm:$0xff]  ;;  %v645_v47 = vld [vmem:[#allocation4 + $0xd9] sm:$0xff]  ;;  %v646_v27 = vld [vmem:[#allocation4 + $0xe1] sm:$0xff] }
  0x65   :  { %906 = vst [vmem:[#allocation3 + $0x48] sm:$0xff] %v876_v3  ;;  %v849_v9 = vmul.f32 0.125, %v819_v24  ;;  %v760_v31 = vmul.f32 0.375, %v730_v11  ;;  %v611_v44 = vmul.f32 0.125, %v1107_v45  ;;  %v671_v50 = vmul.f32 0.375, %v641_v33  ;;  %v824_v11 = vld [vmem:[#allocation4 + $0xcb] sm:$0xff] }
  0x66   :  { %v878_v51 = vadd.f32 %v848_v4, %v788_v10  ;;  %v789_v52 = vadd.f32 %v759_v32, %v699_v19  ;;  %v700_v48 = vadd.f32 %v670_v25, %v610_v35  ;;  %907 = vst [vmem:[#allocation3 + $0x50] sm:$0xff] %v877_v20  ;;  %v850_v12 = vmul.f32 0.125, %v820_v37  ;;  %v735_v3 = vld [vmem:[#allocation4 + $0xda] sm:$0xff] }
  0x67   :  { %v761_v29 = vmul.f32 0.375, %v731_v34  ;;  %v612_v58 = vmul.f32 0.125, %v1109_v49  ;;  %v672_v59 = vmul.f32 0.375, %v642_v40  ;;  %v701_v62 = vadd.f32 %v671_v50, %v611_v44  ;;  %v825_v10 = vld [vmem:[#allocation4 + $0xdb] sm:$0xff]  ;;  %v647_v40 = vld [vmem:[#allocation4 + $0xf1] sm:$0xff]  ;;  %v826_v44 = vld [vmem:[#allocation4 + $0xe3] sm:$0xff] }
  0x68   :  { %908 = vst [vmem:[#allocation3 + $0x58] sm:$0xff] %v878_v51  ;;  %v879_v39 = vadd.f32 %v849_v9, %v789_v52  ;;  %v790_v1 = vadd.f32 %v760_v31, %v700_v48  ;;  %v851_v45 = vmul.f32 0.125, %v821_v46  ;;  %v762_v42 = vmul.f32 0.375, %v732_v56  ;;  %v736_v34 = vld [vmem:[#allocation4 + $0xe2] sm:$0xff]  ;;  %v737_v46 = vld [vmem:[#allocation4 + $0xf2] sm:$0xff] }
  0x69   :  { %v702_v7 = vadd.f32 %v672_v59, %v612_v58  ;;  %v613_v43 = vmul.f32 0.125, %v1113_v60  ;;  %v673_v22 = vmul.f32 0.375, %v643_v26  ;;  %v791_v0 = vadd.f32 %v761_v29, %v701_v62  ;;  %v648_v50 = vld [vmem:[#allocation4 + $0xf9] sm:$0xff] }
  0x6a   :  { %909 = vst [vmem:[#allocation3 + $0x60] sm:$0xff] %v879_v39  ;;  %v880_v16 = vadd.f32 %v850_v12, %v790_v1  ;;  %v852_v49 = vmul.f32 0.125, %v822_v36  ;;  %v763_v14 = vmul.f32 0.375, %v733_v63  ;;  %v614_v28 = vmul.f32 0.125, %v1116_v61  ;;  %v827_v58 = vld [vmem:[#allocation4 + $0xf3] sm:$0xff]  ;;  %v649_v1 = vld [vmem:[#allocation4 + $0x109] sm:$0xff] }
  0x6b   :  { %v792_v2 = vadd.f32 %v762_v42, %v702_v7  ;;  %v703_v23 = vadd.f32 %v673_v22, %v613_v43  ;;  %v674_v24 = vmul.f32 0.375, %v644_v55  ;;  %v881_v4 = vadd.f32 %v851_v45, %v791_v0  ;;  %v738_v59 = vld [vmem:[#allocation4 + $0xfa] sm:$0xff]  ;;  %v739_v43 = vld [vmem:[#allocation4 + $0x10a] sm:$0xff] }
  0x6c   :  { %910 = vst [vmem:[#allocation3 + $0x68] sm:$0xff] %v880_v16  ;;  %v853_v60 = vmul.f32 0.125, %v823_v8  ;;  %v764_v32 = vmul.f32 0.375, %v734_v13  ;;  %v615_v33 = vmul.f32 0.125, %v1119_v21  ;;  %v675_v37 = vmul.f32 0.375, %v645_v47  ;;  %v828_v42 = vld [vmem:[#allocation4 + $0xfb] sm:$0xff] }
  0x6d   :  { %v882_v19 = vadd.f32 %v852_v49, %v792_v2  ;;  %v793_v35 = vadd.f32 %v763_v14, %v703_v23  ;;  %v704_v25 = vadd.f32 %v674_v24, %v614_v28  ;;  %911 = vst [vmem:[#allocation3 + $0x70] sm:$0xff] %v881_v4  ;;  %v854_v20 = vmul.f32 0.125, %v824_v11  ;;  %v650_v22 = vld [vmem:[#allocation4 + $0x111] sm:$0xff]  ;;  %v651_v28 = vld [vmem:[#allocation4 + $0x121] sm:$0xff] }
  0x6e   :  { %v765_v61 = vmul.f32 0.375, %v735_v3  ;;  %v616_v9 = vmul.f32 0.125, %v1121_v17  ;;  %v676_v31 = vmul.f32 0.375, %v646_v27  ;;  %v705_v48 = vadd.f32 %v675_v37, %v615_v33  ;;  %v829_v0 = vld [vmem:[#allocation4 + $0x10b] sm:$0xff]  ;;  %v830_v27 = vld [vmem:[#allocation4 + $0x113] sm:$0xff]  ;;  %v741_v4 = vld [vmem:[#allocation4 + $0x122] sm:$0xff] }
  0x6f   :  { %912 = vst [vmem:[#allocation3 + $0x78] sm:$0xff] %v882_v19  ;;  %v883_v51 = vadd.f32 %v853_v60, %v793_v35  ;;  %v794_v52 = vadd.f32 %v764_v32, %v704_v25  ;;  %v855_v21 = vmul.f32 0.125, %v825_v10  ;;  %v766_v26 = vmul.f32 0.375, %v736_v34  ;;  %v740_v23 = vld [vmem:[#allocation4 + $0x112] sm:$0xff]  ;;  %v652_v10 = vld [vmem:[#allocation4 + $0x129] sm:$0xff] }
  0x70   :  { %v706_v56 = vadd.f32 %v676_v31, %v616_v9  ;;  %v617_v12 = vmul.f32 0.125, %v1125_v38  ;;  %v677_v29 = vmul.f32 0.375, %v647_v40  ;;  %v795_v63 = vadd.f32 %v765_v61, %v705_v48  ;;  %v831_v34 = vld [vmem:[#allocation4 + $0x123] sm:$0xff]  ;;  %v653_v31 = vld [vmem:[#allocation4 + $0x139] sm:$0xff]  ;;  %v832_v48 = vld [vmem:[#allocation4 + $0x12b] sm:$0xff] }
  0x71   :  { %913 = vst [vmem:[#allocation3 + $0x80] sm:$0xff] %v883_v51  ;;  %v884_v36 = vadd.f32 %v854_v20, %v794_v52  ;;  %v856_v17 = vmul.f32 0.125, %v826_v44  ;;  %v767_v39 = vmul.f32 0.375, %v737_v46  ;;  %v618_v55 = vmul.f32 0.125, %v1127_v53  ;;  %v742_v40 = vld [vmem:[#allocation4 + $0x12a] sm:$0xff] }
  0x72   :  { %v796_v62 = vadd.f32 %v766_v26, %v706_v56  ;;  %v707_v45 = vadd.f32 %v677_v29, %v617_v12  ;;  %v678_v7 = vmul.f32 0.375, %v648_v50  ;;  %v885_v8 = vadd.f32 %v855_v21, %v795_v63  ;;  %v743_v21 = vld [vmem:[#allocation4 + $0x13a] sm:$0xff] }
  0x73   :  { %914 = vst [vmem:[#allocation3 + $0x88] sm:$0xff] %v884_v36  ;;  %v857_v38 = vmul.f32 0.125, %v827_v58  ;;  %v768_v13 = vmul.f32 0.375, %v738_v59  ;;  %v619_v16 = vmul.f32 0.125, %v1131_v6  ;;  %v679_v2 = vmul.f32 0.375, %v649_v1  ;;  %v654_v50 = vld [vmem:[#allocation4 + $0x141] sm:$0xff] }
  0x74   :  { %v886_v49 = vadd.f32 %v856_v17, %v796_v62  ;;  %v797_v14 = vadd.f32 %v767_v39, %v707_v45  ;;  %v708_v47 = vadd.f32 %v678_v7, %v618_v55  ;;  %915 = vst [vmem:[#allocation3 + $0x90] sm:$0xff] %v885_v8  ;;  %v858_v24 = vmul.f32 0.125, %v828_v42  ;;  %v833_v29 = vld [vmem:[#allocation4 + $0x13b] sm:$0xff]  ;;  %v655_v39 = vld [vmem:[#allocation4 + $0x151] sm:$0xff]  ;;  %v834_v55 = vld [vmem:[#allocation4 + $0x143] sm:$0xff] }
  0x75   :  { %v769_v53 = vmul.f32 0.375, %v739_v43  ;;  %v620_v11 = vmul.f32 0.125, %v1133_v15  ;;  %v680_v3 = vmul.f32 0.375, %v650_v22  ;;  %v709_v33 = vadd.f32 %v679_v2, %v619_v16  ;;  %v744_v17 = vld [vmem:[#allocation4 + $0x142] sm:$0xff]  ;;  %v745_v7 = vld [vmem:[#allocation4 + $0x152] sm:$0xff] }
  0x76   :  { %916 = vst [vmem:[#allocation3 + $0x98] sm:$0xff] %v886_v49  ;;  %v887_v60 = vadd.f32 %v857_v38, %v797_v14  ;;  %v798_v32 = vadd.f32 %v768_v13, %v708_v47  ;;  %v859_v6 = vmul.f32 0.125, %v829_v0  ;;  %v770_v35 = vmul.f32 0.375, %v740_v23  ;;  %v656_v8 = vld [vmem:[#allocation4 + $0x159] sm:$0xff] }
  0x77   :  { %v710_v19 = vadd.f32 %v680_v3, %v620_v11  ;;  %v621_v25 = vmul.f32 0.125, %v1137_v30  ;;  %v681_v37 = vmul.f32 0.375, %v651_v28  ;;  %v799_v61 = vadd.f32 %v769_v53, %v709_v33  ;;  %v835_v49 = vld [vmem:[#allocation4 + $0x153] sm:$0xff] }
  0x78   :  { %917 = vst [vmem:[#allocation3 + $0xa0] sm:$0xff] %v887_v60  ;;  %v888_v20 = vadd.f32 %v858_v24, %v798_v32  ;;  %v860_v15 = vmul.f32 0.125, %v830_v27  ;;  %v771_v9 = vmul.f32 0.375, %v741_v4  ;;  %v622_v51 = vmul.f32 0.125, %v1140_v18  ;;  %v746_v23 = vld [vmem:[#allocation4 + $0x15a] sm:$0xff] }
  0x79   :  { %v800_v44 = vadd.f32 %v770_v35, %v710_v19  ;;  %v711_v46 = vadd.f32 %v681_v37, %v621_v25  ;;  %v682_v52 = vmul.f32 0.375, %v652_v10  ;;  %v889_v56 = vadd.f32 %v859_v6, %v799_v61  ;;  %v836_v4 = vld [vmem:[#allocation4 + $0x15b] sm:$0xff] }
  0x7a   :  { %918 = vst [vmem:[#allocation3 + $0xa8] sm:$0xff] %v888_v20  ;;  %v861_v30 = vmul.f32 0.125, %v831_v34  ;;  %v772_v26 = vmul.f32 0.375, %v742_v40  ;;  %v623_v12 = vmul.f32 0.125, %v1143_v54  ;;  %v683_v63 = vmul.f32 0.375, %v653_v31 }
  0x7b   :  { %v890_v58 = vadd.f32 %v860_v15, %v800_v44  ;;  %v801_v59 = vadd.f32 %v771_v9, %v711_v46  ;;  %v712_v36 = vadd.f32 %v682_v52, %v622_v51  ;;  %919 = vst [vmem:[#allocation3 + $0xb0] sm:$0xff] %v889_v56  ;;  %v862_v1 = vmul.f32 0.125, %v832_v48 }
  0x7c   :  { %v773_v18 = vmul.f32 0.375, %v743_v21  ;;  %v624_v62 = vmul.f32 0.125, %v1145_v5  ;;  %v684_v45 = vmul.f32 0.375, %v654_v50  ;;  %v713_v22 = vadd.f32 %v683_v63, %v623_v12 }
  0x7d   :  { %920 = vst [vmem:[#allocation3 + $0xb8] sm:$0xff] %v890_v58  ;;  %v891_v42 = vadd.f32 %v861_v30, %v801_v59  ;;  %v802_v43 = vadd.f32 %v772_v26, %v712_v36  ;;  %v863_v54 = vmul.f32 0.125, %v833_v29  ;;  %v774_v13 = vmul.f32 0.375, %v744_v17 }
  0x7e   :  { %v714_v38 = vadd.f32 %v684_v45, %v624_v62  ;;  %v625_v16 = vmul.f32 0.125, %v1149_v41  ;;  %v685_v0 = vmul.f32 0.375, %v655_v39  ;;  %v803_v47 = vadd.f32 %v773_v18, %v713_v22 }
  0x7f   :  { %921 = vst [vmem:[#allocation3 + $0xc0] sm:$0xff] %v891_v42  ;;  %v892_v14 = vadd.f32 %v862_v1, %v802_v43  ;;  %v864_v2 = vmul.f32 0.125, %v834_v55  ;;  %v775_v5 = vmul.f32 0.375, %v745_v7  ;;  %v626_v53 = vmul.f32 0.125, %v1151_v57 }
  0x80   :  { %v804_v28 = vadd.f32 %v774_v13, %v714_v38  ;;  %v715_v24 = vadd.f32 %v685_v0, %v625_v16  ;;  %v686_v11 = vmul.f32 0.375, %v656_v8  ;;  %v893_v3 = vadd.f32 %v863_v54, %v803_v47 }
  0x81   :  { %922 = vst [vmem:[#allocation3 + $0xc8] sm:$0xff] %v892_v14  ;;  %v865_v27 = vmul.f32 0.125, %v835_v49  ;;  %v776_v33 = vmul.f32 0.375, %v746_v23  ;;  %v866_v19 = vmul.f32 0.125, %v836_v4 }
  0x82   :  { %v894_v60 = vadd.f32 %v864_v2, %v804_v28  ;;  %v805_v32 = vadd.f32 %v775_v5, %v715_v24  ;;  %v716_v41 = vadd.f32 %v686_v11, %v626_v53  ;;  %923 = vst [vmem:[#allocation3 + $0xd0] sm:$0xff] %v893_v3 }
  0x84   :  { %924 = vst [vmem:[#allocation3 + $0xd8] sm:$0xff] %v894_v60  ;;  %v895_v6 = vadd.f32 %v865_v27, %v805_v32  ;;  %v806_v10 = vadd.f32 %v776_v33, %v716_v41 }
  0x86   :  { %925 = vst [vmem:[#allocation3 + $0xe0] sm:$0xff] %v895_v6  ;;  %v896_v35 = vadd.f32 %v866_v19, %v806_v10 }
  0x88   :  { %926 = vst [vmem:[#allocation3 + $0xe8] sm:$0xff] %v896_v35 }
  0x89   :  { %1010 = shalt.err (!%p1007_p12)  }
  0x8a   :  { %s1011_s24 = scalar_lea.hbm %s1194_s1, 3840 }
  0x8b   :  { %p1012_p13 = scmp.ne.s32.totalorder %s1194_s1, %s1011_s24  ;;  %p1015_p0 = scmp.lt.u32.totalorder %s1011_s24, %s1194_s1 }
  0x8d   :  { %p1017_p1 = pnand %p1015_p0, %p1012_p13 }
  0x8f   :  { %1020 = shalt.err (!%p1017_p1)  }
  0x90   :  { %940 = dma.vmem_to_hbm [thread:$0]  %s938_s19, 3840, %s1194_s1, [#allocation6] }
  0x91   :  { %1023 = dma.done.wait [#allocation6], 3840 }
  0x92   :  { %1024 = vsyncadd [#allocation6], 4294963456 }
  0x93   :  { %945 = vsyncmov [#allocation5] }
  0x96   :  { %s946_s2 = vpop.sfrf %945 }
  0x97   :  { %p971_p2 = scmp.ne.s32.totalorder %s946_s2, 0 }
  0x99   :  { %950 = shalt.err (%p971_p2)  }
  0x9a   :  { %952 = vsyncmov [#allocation5 + $0x1] }
  0x9d   :  { %s953_s3 = vpop.sfrf %952 }
  0x9e   :  { %p972_p3 = scmp.ne.s32.totalorder %s953_s3, 0 }
  0xa0   :  { %957 = shalt.err (%p972_p3)  }
  0xa1   :  { %958 = vsyncmov [#allocation6] }
  0xa4   :  { %s959_s4 = vpop.sfrf %958 }
  0xa5   :  { %p973_p4 = scmp.ne.s32.totalorder %s959_s4, 0 }
  0xa7   :  { %963 = shalt.err (%p973_p4)  }
  0xa8   :  { %965 = vsyncmov [#allocation6 + $0x1] }
  0xab   :  { %s966_s5 = vpop.sfrf %965 }
  0xac   :  { %p974_p5 = scmp.ne.s32.totalorder %s966_s5, 0 }
  0xae   :  { %970 = shalt.err (%p974_p5)  }

</bundles_post_ra>
